<compile_context>
chip_gen: v6e
topology: v6e:2x2x1
jax: 0.10.0
libtpu: 0.0.40
codegen_flags: <defaults>
</compile_context>

<pallas_src>
import math

import jax
import jax.numpy as jnp
from jax.experimental import pallas as pl
from jax.experimental.pallas import tpu as pltpu


def sinusoidal_encoding(num_tokens: int, embedding_dim: int) -> jnp.ndarray:
    """Deterministic sinusoidal embedding table (matches _sinusoidal_encoding)."""
    position = jnp.arange(num_tokens, dtype=jnp.float32)[:, None]
    div_term = jnp.exp(
        jnp.arange(0, embedding_dim, 2, dtype=jnp.float32)
        * (-math.log(10000.0) / embedding_dim)
    )
    enc = jnp.zeros((num_tokens, embedding_dim), dtype=jnp.float32)
    enc = enc.at[:, 0::2].set(jnp.sin(position * div_term))
    enc = enc.at[:, 1::2].set(jnp.cos(position * div_term))
    return enc


# ---------------------------------------------------------------------------
# Kernels
# ---------------------------------------------------------------------------

def _embed_resident_kernel(ids_ref, table_ref, out_ref):
    """Gather TB embedding rows from a VMEM-resident table via one-hot matmul.

    ids_ref:   (TB, 1) int32 token ids for this block.
    table_ref: (V, D)  full embedding table, resident in VMEM across the grid.
    out_ref:   (TB, D) output block.
    """
    ids = ids_ref[...]                                   # (TB, 1)
    tb = out_ref.shape[0]
    vocab = table_ref.shape[0]
    vocab_iota = jax.lax.broadcasted_iota(jnp.int32, (tb, vocab), 1)
    onehot = (vocab_iota == ids).astype(table_ref.dtype)  # (TB, V)
    out_ref[...] = jnp.dot(
        onehot, table_ref[...], preferred_element_type=jnp.float32
    ).astype(out_ref.dtype)


def _embed_row_gather_kernel(ids_ref, emb_row_ref, out_ref):
    """Fallback: emb_row_ref is the (1, D) row selected via data-dependent DMA."""
    del ids_ref
    out_ref[...] = emb_row_ref[...]


# ---------------------------------------------------------------------------
# Wrapper
# ---------------------------------------------------------------------------

# Conservative resident-table threshold that leaves headroom for double-buffered
# I/O blocks on all generations (v5e 16 MiB default scoped limit, v7x 64 MiB
# physical VMEM).
_RESIDENT_TABLE_LIMIT_BYTES = 12 * 1024 * 1024


def token_embedding(ids: jnp.ndarray, embedding: jnp.ndarray,
                    *, token_block: int = 128) -> jnp.ndarray:
    """Pallas gather: returns embedding[ids] with shape ids.shape + (D,)."""
    orig_shape = ids.shape
    V, D = embedding.shape
    assert D % 128 == 0, "embedding_dim must be a multiple of 128 (lane width)"

    # Clamp ids so out-of-range tokens cannot drive an OOB access.
    flat_ids = jnp.clip(ids.reshape(-1).astype(jnp.int32), 0, V - 1)
    N = flat_ids.shape[0]

    table_bytes = V * D * embedding.dtype.itemsize

    if table_bytes <= _RESIDENT_TABLE_LIMIT_BYTES:
        # --- Resident-table path: one-hot MXU gather, TB tokens per step. ---
        TB = token_block
        padded_N = ((N + TB - 1) // TB) * TB
        ids_padded = (
            jnp.zeros((padded_N, 1), dtype=jnp.int32).at[:N, 0].set(flat_ids)
        )
        grid = (padded_N // TB,)

        out = pl.pallas_call(
            _embed_resident_kernel,
            out_shape=jax.ShapeDtypeStruct((padded_N, D), embedding.dtype),
            grid_spec=pltpu.PrefetchScalarGridSpec(
                num_scalar_prefetch=0,
                grid=grid,
                in_specs=[
                    # TB token ids per step (sublane-oriented column vector).
                    pl.BlockSpec((TB, 1), lambda i: (i, 0)),
                    # Whole table, same block every step -> DMA'd once, resident.
                    pl.BlockSpec((V, D), lambda i: (0, 0)),
                ],
                out_specs=pl.BlockSpec((TB, D), lambda i: (i, 0)),
            ),
            compiler_params=pltpu.CompilerParams(
                dimension_semantics=("parallel",),
                vmem_limit_bytes=32 * 1024 * 1024,
            ),
        )(ids_padded, embedding)
        out = out[:N]
    else:
        # --- Large-vocab fallback: data-dependent per-row gather. ---
        # TODO(synk): replace with a double-buffered manual DMA gather
        # (memory_space=pl.ANY + pltpu.make_async_copy of TB rows per step)
        # for HBM-bandwidth-bound performance on huge vocabularies.
        out = pl.pallas_call(
            _embed_row_gather_kernel,
            out_shape=jax.ShapeDtypeStruct((N, D), embedding.dtype),
            grid_spec=pltpu.PrefetchScalarGridSpec(
                num_scalar_prefetch=1,
                grid=(N,),
                in_specs=[
                    pl.BlockSpec((1, D), lambda i, ids_sm: (ids_sm[i], 0)),
                ],
                out_specs=pl.BlockSpec((1, D), lambda i, ids_sm: (i, 0)),
            ),
            compiler_params=pltpu.CompilerParams(
                dimension_semantics=("arbitrary",),
            ),
        )(flat_ids, embedding)

    return out.reshape(*orig_shape, D)


if __name__ == "__main__":
    # Small config consistent with the module:
    #   num_tokens = 16, n_heads = 4, head_dim = 32  -> embedding_dim = 128
    #   batch = 2, seq = 8
    num_tokens = 16
    n_heads = 4
    head_dim = 32
    embedding_dim = n_heads * head_dim
    batch, seq = 2, 8

    # Deterministic parameter init (encoding == 'sinusoidal').
    embedding = sinusoidal_encoding(num_tokens, embedding_dim)

    key = jax.random.PRNGKey(0)
    x = jax.random.randint(key, (batch, seq), minval=0, maxval=num_tokens,
                           dtype=jnp.int32)

    out = token_embedding(x, embedding)
    out = jax.block_until_ready(out)

    # Reference check against plain JAX gather (same semantics as torch indexing).
    ref = embedding[x]
    assert out.shape == (batch, seq, embedding_dim)
    assert jnp.allclose(out, ref, rtol=1e-5, atol=1e-6), \
        "Pallas embedding gather mismatch"

    print("KERNEL_OK")
</pallas_src>

<mosaic_0001>
module attributes {stable_mosaic.version = 11 : i64} {
  func.func @_embed_resident_kernel(%arg0: i32, %arg1: memref<128x1xi32, #tpu.memory_space<vmem>>, %arg2: memref<16x128xf32, #tpu.memory_space<vmem>>, %arg3: memref<128x128xf32, #tpu.memory_space<vmem>>) attributes {dimension_semantics = [#tpu.dimension_semantics<parallel>], iteration_bounds = array<i64: 1>, scalar_prefetch = 0 : i64, scratch_operands = 0 : i64, tpu.core_type = #tpu.core_type<tc>, window_params = [{transform_indices = @transform_0, window_bounds = array<i64: 128, 1>}, {pipeline_mode = #tpu.pipeline_mode<synchronous>, transform_indices = @transform_1, window_bounds = array<i64: 16, 128>}, {transform_indices = @transform_2, window_bounds = array<i64: 128, 128>}]} {
    %c0 = arith.constant 0 : index
    %c0_0 = arith.constant 0 : index
    %0 = vector.load %arg1[%c0, %c0_0] : memref<128x1xi32, #tpu.memory_space<vmem>>, vector<128x1xi32>
    %1 = tpu.iota {dimensions = array<i32: 1>} : vector<128x16xi32>
    %2 = vector.broadcast %0 : vector<128x1xi32> to vector<128x16xi32>
    %3 = arith.cmpi eq, %1, %2 : vector<128x16xi32>
    %4 = arith.extui %3 : vector<128x16xi1> to vector<128x16xi32>
    %5 = arith.sitofp %4 : vector<128x16xi32> to vector<128x16xf32>
    %c0_1 = arith.constant 0 : index
    %c0_2 = arith.constant 0 : index
    %6 = vector.load %arg2[%c0_1, %c0_2] : memref<16x128xf32, #tpu.memory_space<vmem>>, vector<16x128xf32>
    %cst = arith.constant dense<0.000000e+00> : vector<128x128xf32>
    %7 = tpu.matmul %5, %6, %cst {dimension_numbers = #tpu.dot_dimension_numbers<[1], [0], [0], [1], [0, 0, 1, 1], [], []>} : vector<128x16xf32>, vector<16x128xf32>, vector<128x128xf32> -> vector<128x128xf32>
    %c0_3 = arith.constant 0 : index
    %c0_4 = arith.constant 0 : index
    %8 = vector.load %arg3[%c0_3, %c0_4] : memref<128x128xf32, #tpu.memory_space<vmem>>, vector<128x128xf32>
    tpu.vector_store %arg3[%c0_3, %c0_4], %7 {strides = array<i32>} : memref<128x128xf32, #tpu.memory_space<vmem>>, vector<128x128xf32>,
    return
  }
  func.func @transform_0(%arg0: i32) -> (i32, i32) {
    %c0_i32 = arith.constant 0 : i32
    %c0_i32_0 = arith.constant 0 : i32
    return %arg0, %c0_i32 : i32, i32
  }
  func.func @transform_1(%arg0: i32) -> (i32, i32) {
    %c0_i32 = arith.constant 0 : i32
    %c0_i32_0 = arith.constant 0 : i32
    %c0_i32_1 = arith.constant 0 : i32
    return %c0_i32, %c0_i32_0 : i32, i32
  }
  func.func @transform_2(%arg0: i32) -> (i32, i32) {
    %c0_i32 = arith.constant 0 : i32
    %c0_i32_0 = arith.constant 0 : i32
    return %arg0, %c0_i32 : i32, i32
  }
}

</mosaic_0001>

<bundles_post_ra>
// kernel: tpu_custom_call.1
= control target key start
LH: loop header
LB: loop body
LE: loop exit
PB: predicated region body
PF: predicated region fallthrough
CT: control target
= control target key end

     0   :  { %v465_v2 = vmov 0   ;;  %s576_s0 = inlined_call_operand.vmem [shape: s32[128,1], index: 0, kind: input, shape index: {}]   ;;  %s577_s1 = inlined_call_operand.vmem [shape: f32[16,128], index: 1, kind: input, shape index: {}]   ;;  %s578_s2 = inlined_call_operand.hbm [shape: f32[128,128], index: 2, kind: output, shape index: {}]  }
   0x1   :  { %v13_v0 = vld [vmem:[%s576_s0 + $0x8] sm:$0xff]  ;;  %v12_v1 = vld [vmem:[%s576_s0] sm:$0xff]  ;;  %442 = vset.pattern.permute.xlu1 %v465_v2  ;;  %441 = vset.pattern.permute.xlu0 %v465_v2 }
   0x2   :  { %34 = vperm.xlu1 %442, %v13_v0   ;;  %31 = vperm.xlu0 %441, %v12_v1   ;;  %v21_v3 = vld [vmem:[%s576_s0 + $0x48] sm:$0xff]  ;;  %v20_v4 = vld [vmem:[%s576_s0 + $0x40] sm:$0xff] }
   0x3   :  { %v127_v5 = vld [vmem:[%s577_s1 + $0x8] sm:$0xff]  ;;  %v126_v6 = vld [vmem:[%s577_s1] sm:$0xff] }
   0x6   :  { %58 = vperm.xlu1 %442, %v21_v3   ;;  %55 = vperm.xlu0 %441, %v20_v4  }
   0x7   :  { %7 = vsyncpa [#allocation3], 0  ;;  %v22_v7 = vld [vmem:[%s576_s0 + $0x50] sm:$0xff]  ;;  %404 = vmatprep.subr.mxu0 %v127_v5  ;;  %432 = vmatprep.subr.mxu1 %v127_v5  ;;  %v23_v9 = vld [vmem:[%s576_s0 + $0x58] sm:$0xff]  ;;  %v28_v19 = vlaneseq  ;;  %vm128_vm0 = vcmask 130048   ;;  %v466_v23 = vmov 0.0  }
   0x8   :  { %v14_v8 = vld [vmem:[%s576_s0 + $0x10] sm:$0xff]  ;;  %405 = vmatpush3.msra.mxu0 %v127_v5  ;;  %434 = vmatpush3.msra.mxu1 %v127_v5  ;;  %v15_v10 = vld [vmem:[%s576_s0 + $0x18] sm:$0xff]  ;;  %v24_v11 = vld [vmem:[%s576_s0 + $0x60] sm:$0xff] }
   0x9   :  { %406 = vmatprep.subr.mxu0 %v126_v6  ;;  %433 = vmatprep.subr.mxu1 %v126_v6  ;;  %v16_v12 = vld [vmem:[%s576_s0 + $0x20] sm:$0xff]  ;;  %v25_v13 = vld [vmem:[%s576_s0 + $0x68] sm:$0xff]  ;;  %v26_v15 = vld [vmem:[%s576_s0 + $0x70] sm:$0xff]  ;;  %v539_v20 = vand.u32 127, %v28_v19 }
   0xa   :  { %61 = vperm.xlu1 %442, %v22_v7   ;;  %37 = vperm.xlu0 %441, %v14_v8   ;;  %v17_v14 = vld [vmem:[%s576_s0 + $0x28] sm:$0xff]  ;;  %v18_v16 = vld [vmem:[%s576_s0 + $0x30] sm:$0xff]  ;;  %v27_v17 = vld [vmem:[%s576_s0 + $0x78] sm:$0xff] }
   0xb   :  { %407 = vmatpush3.msra.mxu0 %v126_v6  ;;  %435 = vmatpush3.msra.mxu1 %v126_v6  ;;  %v19_v18 = vld [vmem:[%s576_s0 + $0x38] sm:$0xff]  ;;  %s467_s0 = smov [#allocation2]  }
   0xc   :  { %s343_s16 = sshll.u32 %s467_s0, 4  ;;  %s344_s16 = int_to_ptr.vmem [resolvable:$true] %s343_s16 }
   0xd   :  { %s443_s17 = scalar_lea.vmem %s344_s16, 2048  ;;  %p448_p1 = scmp.lt.s32.totalorder %s344_s16, %s344_s16 }
   0xe   :  { %64 = vperm.xlu1 %442, %v23_v9   ;;  %40 = vperm.xlu0 %441, %v15_v10   ;;  %p444_p0 = scmp.ne.s32.totalorder %s344_s16, %s443_s17  ;;  %p449_p2 = scmp.lt.s32.totalorder %s443_s17, %s443_s17 }
  0x10   :  { %p450_p3 = por %p449_p2, %p448_p1 }
  0x12   :  { %67 = vperm.xlu1 %442, %v24_v11   ;;  %43 = vperm.xlu0 %441, %v16_v12   ;;  %p451_p4 = pnand %p450_p3, %p444_p0 }
  0x16   :  { %70 = vperm.xlu1 %442, %v25_v13   ;;  %46 = vperm.xlu0 %441, %v17_v14  }
  0x1a   :  { %73 = vperm.xlu1 %442, %v26_v15   ;;  %49 = vperm.xlu0 %441, %v18_v16  }
  0x1e   :  { %76 = vperm.xlu1 %442, %v27_v17   ;;  %52 = vperm.xlu0 %441, %v19_v18  }
  0x7d   :  { %v35_v21 = vpop.permute.xlu1 %34  ;;  %v32_v22 = vpop.permute.xlu0 %31 }
  0x7e   :  { %vm79_vm1 = vcmp.eq.s32.totalorder %v539_v20, %v35_v21  ;;  %vm78_vm2 = vcmp.eq.s32.totalorder %v539_v20, %v32_v22 }
  0x7f   :  { %v355_v24 = vsel %vm79_vm1, 1.0, %v466_v23  ;;  %v354_v25 = vsel %vm78_vm2, 1.0, %v466_v23 }
  0x80   :  { %408 = vmatprep.mubr.msk.f32.mxu0 %vm128_vm0, %v354_v25 }
  0x81   :  { %v59_v26 = vpop.permute.xlu1 %58  ;;  %409 = vmatmul.mubr.msk.f32.vlgmr.msra.gmra.mxu0 %vm128_vm0, %v355_v24  ;;  %v56_v27 = vpop.permute.xlu0 %55 }
  0x82   :  { %vm87_vm3 = vcmp.eq.s32.totalorder %v539_v20, %v59_v26  ;;  %vm86_vm4 = vcmp.eq.s32.totalorder %v539_v20, %v56_v27 }
  0x83   :  { %v363_v28 = vsel %vm87_vm3, 1.0, %v466_v23  ;;  %v362_v29 = vsel %vm86_vm4, 1.0, %v466_v23 }
  0x84   :  { %420 = vmatprep.mubr.msk.f32.mxu1 %vm128_vm0, %v362_v29 }
  0x85   :  { %v62_v30 = vpop.permute.xlu1 %61  ;;  %421 = vmatmul.mubr.msk.f32.vlgmr.msra.gmra.mxu1 %vm128_vm0, %v363_v28  ;;  %v38_v31 = vpop.permute.xlu0 %37 }
  0x86   :  { %vm88_vm5 = vcmp.eq.s32.totalorder %v539_v20, %v62_v30  ;;  %vm80_vm6 = vcmp.eq.s32.totalorder %v539_v20, %v38_v31 }
  0x87   :  { %v364_v32 = vsel %vm88_vm5, 1.0, %v466_v23  ;;  %v356_v33 = vsel %vm80_vm6, 1.0, %v466_v23 }
  0x88   :  { %411 = vmatprep.mubr.msk.f32.mxu0 %vm128_vm0, %v356_v33  ;;  %423 = vmatprep.mubr.msk.f32.mxu1 %vm128_vm0, %v364_v32 }
  0x89   :  { %v65_v34 = vpop.permute.xlu1 %64  ;;  %v41_v35 = vpop.permute.xlu0 %40 }
  0x8a   :  { %vm89_vm7 = vcmp.eq.s32.totalorder %v539_v20, %v65_v34  ;;  %vm81_vm8 = vcmp.eq.s32.totalorder %v539_v20, %v41_v35 }
  0x8b   :  { %v365_v36 = vsel %vm89_vm7, 1.0, %v466_v23  ;;  %v357_v37 = vsel %vm81_vm8, 1.0, %v466_v23 }
  0x8c   :  { %412 = vmatmul.mubr.msk.f32.gmra.mxu0 %vm128_vm0, %v357_v37  ;;  %424 = vmatmul.mubr.msk.f32.gmra.mxu1 %vm128_vm0, %v365_v36 }
  0x8d   :  { %v68_v38 = vpop.permute.xlu1 %67  ;;  %v44_v39 = vpop.permute.xlu0 %43 }
  0x8e   :  { %vm90_vm9 = vcmp.eq.s32.totalorder %v539_v20, %v68_v38  ;;  %vm82_vm10 = vcmp.eq.s32.totalorder %v539_v20, %v44_v39 }
  0x8f   :  { %v366_v40 = vsel %vm90_vm9, 1.0, %v466_v23  ;;  %v358_v41 = vsel %vm82_vm10, 1.0, %v466_v23 }
  0x90   :  { %414 = vmatprep.mubr.msk.f32.mxu0 %vm128_vm0, %v358_v41  ;;  %426 = vmatprep.mubr.msk.f32.mxu1 %vm128_vm0, %v366_v40 }
  0x91   :  { %v71_v42 = vpop.permute.xlu1 %70  ;;  %v47_v43 = vpop.permute.xlu0 %46 }
  0x92   :  { %vm91_vm11 = vcmp.eq.s32.totalorder %v539_v20, %v71_v42  ;;  %vm83_vm12 = vcmp.eq.s32.totalorder %v539_v20, %v47_v43 }
  0x93   :  { %v367_v44 = vsel %vm91_vm11, 1.0, %v466_v23  ;;  %v359_v45 = vsel %vm83_vm12, 1.0, %v466_v23 }
  0x94   :  { %415 = vmatmul.mubr.msk.f32.gmra.mxu0 %vm128_vm0, %v359_v45  ;;  %427 = vmatmul.mubr.msk.f32.gmra.mxu1 %vm128_vm0, %v367_v44 }
  0x95   :  { %v74_v46 = vpop.permute.xlu1 %73  ;;  %v50_v47 = vpop.permute.xlu0 %49 }
  0x96   :  { %vm92_vm13 = vcmp.eq.s32.totalorder %v539_v20, %v74_v46  ;;  %vm84_vm14 = vcmp.eq.s32.totalorder %v539_v20, %v50_v47 }
  0x97   :  { %v368_v48 = vsel %vm92_vm13, 1.0, %v466_v23  ;;  %v360_v49 = vsel %vm84_vm14, 1.0, %v466_v23 }
  0x98   :  { %417 = vmatprep.mubr.msk.f32.mxu0 %vm128_vm0, %v360_v49  ;;  %429 = vmatprep.mubr.msk.f32.mxu1 %vm128_vm0, %v368_v48 }
  0x99   :  { %v77_v50 = vpop.permute.xlu1 %76  ;;  %v53_v51 = vpop.permute.xlu0 %52 }
  0x9a   :  { %vm93_vm15 = vcmp.eq.s32.totalorder %v539_v20, %v77_v50  ;;  %vm85_vm1 = vcmp.eq.s32.totalorder %v539_v20, %v53_v51 }
  0x9b   :  { %v369_v52 = vsel %vm93_vm15, 1.0, %v466_v23  ;;  %v361_v53 = vsel %vm85_vm1, 1.0, %v466_v23 }
  0x9c   :  { %418 = vmatmul.mubr.msk.f32.gmra.mxu0 %vm128_vm0, %v361_v53  ;;  %430 = vmatmul.mubr.msk.f32.gmra.mxu1 %vm128_vm0, %v369_v52 }
 0x141   :  { %v410_v54 = vpop.f32.mrf.mxu0 }
 0x142   :  { %323 = vst [vmem:[#allocation2 + $0x8] sm:$0xff] %v410_v54 }
 0x143   :  { %v243_v55 = vpop.f32.mrf.mxu0 }
 0x144   :  { %322 = vst [vmem:[#allocation2] sm:$0xff] %v243_v55 }
 0x145   :  { %v422_v56 = vpop.f32.mrf.mxu1 }
 0x146   :  { %331 = vst [vmem:[#allocation2 + $0x48] sm:$0xff] %v422_v56 }
 0x147   :  { %v283_v57 = vpop.f32.mrf.mxu1 }
 0x148   :  { %330 = vst [vmem:[#allocation2 + $0x40] sm:$0xff] %v283_v57 }
 0x14c   :  { %v413_v58 = vpop.f32.mrf.mxu0  ;;  %v425_v59 = vpop.f32.mrf.mxu1 }
 0x14d   :  { %325 = vst [vmem:[#allocation2 + $0x18] sm:$0xff] %v413_v58  ;;  %333 = vst [vmem:[#allocation2 + $0x58] sm:$0xff] %v425_v59 }
 0x14e   :  { %v253_v60 = vpop.f32.mrf.mxu0  ;;  %v293_v61 = vpop.f32.mrf.mxu1 }
 0x14f   :  { %324 = vst [vmem:[#allocation2 + $0x10] sm:$0xff] %v253_v60  ;;  %332 = vst [vmem:[#allocation2 + $0x50] sm:$0xff] %v293_v61 }
 0x154   :  { %v416_v62 = vpop.f32.mrf.mxu0  ;;  %v428_v63 = vpop.f32.mrf.mxu1 }
 0x155   :  { %327 = vst [vmem:[#allocation2 + $0x28] sm:$0xff] %v416_v62  ;;  %335 = vst [vmem:[#allocation2 + $0x68] sm:$0xff] %v428_v63 }
 0x156   :  { %v263_v0 = vpop.f32.mrf.mxu0  ;;  %v303_v1 = vpop.f32.mrf.mxu1 }
 0x157   :  { %326 = vst [vmem:[#allocation2 + $0x20] sm:$0xff] %v263_v0  ;;  %334 = vst [vmem:[#allocation2 + $0x60] sm:$0xff] %v303_v1 }
 0x15c   :  { %v419_v2 = vpop.f32.mrf.mxu0  ;;  %v431_v3 = vpop.f32.mrf.mxu1 }
 0x15d   :  { %329 = vst [vmem:[#allocation2 + $0x38] sm:$0xff] %v419_v2  ;;  %337 = vst [vmem:[#allocation2 + $0x78] sm:$0xff] %v431_v3 }
 0x15e   :  { %v273_v4 = vpop.f32.mrf.mxu0  ;;  %v313_v5 = vpop.f32.mrf.mxu1 }
 0x15f   :  { %328 = vst [vmem:[#allocation2 + $0x30] sm:$0xff] %v273_v4  ;;  %336 = vst [vmem:[#allocation2 + $0x70] sm:$0xff] %v313_v5 }
 0x160   :  { %454 = shalt.err (!%p451_p4)
}
 0x161   :  { %s468_s18 = smov 128   ;;  %s469_s19 = smov 8  }
 0x162   :  { %349 = dma.vmem_to_hbm [thread:$0]  %s344_s16, 2048, %s578_s2, [#allocation3], %s468_s18, %s468_s18, %s469_s19  }
 0x163   :  { %463 = dma.done.wait [#allocation3], 2048  }
 0x164   :  { %464 = vsyncadd [#allocation3], 4294965248 }
 0x165   :  { %353 = vsyncpa [#allocation3], 1 }

</bundles_post_ra>
